<compile_context>
chip_gen: v6e
topology: v6e:2x2x1
jax: 0.10.0
libtpu: 0.0.40
codegen_flags: <defaults>
</compile_context>

<pallas_src>
import functools

import jax
import jax.numpy as jnp
from jax import lax
from jax.experimental import pallas as pl
from jax.experimental.pallas import tpu as pltpu

LN_EPS = 1e-6  # matches nn.LayerNorm(hidden_size, eps=1e-06) in the PyTorch module


def _bert_embeddings_kernel(ids_ref, w_hbm, p_ref, g_ref, b_ref, o_ref,
                            wbuf, sem, *, ts, n_chunks):
    """One grid step = `ts` tokens of one batch element.

    ids_ref: SMEM [B, S_pad] int32 (scalar prefetch)
    w_hbm:   HBM  [V, H] word-embedding table (memory_space=pl.ANY)
    p_ref:   VMEM (ts, H) position-embedding tile (resident across inner batch axis)
    g_ref, b_ref: VMEM (1, H) LayerNorm gamma / beta (constant index_map)
    o_ref:   VMEM (ts, H) output tile (flat [B*S_pad, H] view)
    wbuf:    VMEM (ts, H) scratch for gathered word-embedding rows
    sem:     DMA semaphores, one per overlap chunk
    """
    sb = pl.program_id(0)          # sequence-tile index (outer grid axis)
    b = pl.program_id(1)           # batch index (inner grid axis)
    s0 = sb * ts
    cs = ts // n_chunks            # rows per overlap chunk (static Python int)

    # ---- issue ALL word-row gathers up front (deep in-flight DMA gather) ----
    # Rows of chunk k signal sem[k]; chunk k is drained later with a single
    # coalesced (cs, H)-sized wait, so compute on chunk k overlaps the
    # still-in-flight DMAs of chunks k+1 .. n_chunks-1.
    for k in range(n_chunks):
        row0 = k * cs
        for r in range(cs):
            tok = ids_ref[b, s0 + row0 + r]
            pltpu.make_async_copy(
                w_hbm.at[pl.ds(tok, 1)],
                wbuf.at[pl.ds(row0 + r, 1)],
                sem.at[k]).start()

    gamma = g_ref[...].astype(jnp.float32)   # (1, H), hoisted out of the chunk loop
    beta = b_ref[...].astype(jnp.float32)

    # ---- wait + add + LayerNorm, chunk by chunk (overlaps remaining gather) ----
    for k in range(n_chunks):
        row0 = k * cs
        # One wait sized for the whole chunk: drains exactly the cs row copies
        # that signalled sem[k] (same total byte count).
        pltpu.make_async_copy(
            w_hbm.at[pl.ds(0, cs)],
            wbuf.at[pl.ds(row0, cs)],
            sem.at[k]).wait()

        x = (wbuf[pl.ds(row0, cs), :].astype(jnp.float32)
             + p_ref[pl.ds(row0, cs), :].astype(jnp.float32))
        mean = jnp.mean(x, axis=-1, keepdims=True)
        var = jnp.mean(jnp.square(x - mean), axis=-1, keepdims=True)  # biased, like torch LN
        y = (x - mean) * lax.rsqrt(var + LN_EPS) * gamma + beta
        o_ref[pl.ds(row0, cs), :] = y.astype(o_ref.dtype)   # dense chunk store, static slice


def _pick_tile(s_pad, h, esize, vmem_budget=12 * 1024 * 1024):
    """Largest power-of-two tile (8..512 rows) dividing s_pad whose VMEM working
    set (~5 (ts,H) buffers: gather scratch + double-buffered pos + out tiles)
    stays under the v5e 16 MiB default scoped-VMEM limit with headroom."""
    ts = 8
    for cand in (16, 32, 64, 128, 256, 512):
        if s_pad % cand == 0 and 5 * cand * h * max(esize, 4) <= vmem_budget:
            ts = cand
    return ts


def bert_embeddings(input_ids, word_emb, pos_emb, gamma, beta):
    B, S = input_ids.shape
    V, H = word_emb.shape
    P = pos_emb.shape[0]
    assert S <= P, "sequence length exceeds max_position_embeddings"

    # Pad the sequence to a multiple of 8 rows so (ts, H) blocks on the flat
    # [B*S_pad, H] output always satisfy the (8, 128) sublane constraint.
    S_pad = (S + 7) // 8 * 8
    ids = jnp.clip(input_ids.astype(jnp.int32), 0, V - 1)   # guard against OOB HBM DMA
    if S_pad != S:
        ids = jnp.pad(ids, ((0, 0), (0, S_pad - S)))         # pad with a valid id (0)
    pos = pos_emb                                             # full table, no wrapper slice
    if S_pad > P:
        pos = jnp.pad(pos_emb, ((0, S_pad - P), (0, 0)))

    esize = jnp.dtype(word_emb.dtype).itemsize
    ts = _pick_tile(S_pad, H, esize)
    n_tiles = S_pad // ts
    n_chunks = 4 if ts >= 32 else (2 if ts >= 16 else 1)      # cs = ts // n_chunks >= 8

    g2 = gamma.reshape(1, H)
    b2 = beta.reshape(1, H)

    grid_spec = pltpu.PrefetchScalarGridSpec(
        num_scalar_prefetch=1,                                # input_ids -> SMEM
        grid=(n_tiles, B),                                    # batch innermost -> pos tile resident
        in_specs=[
            pl.BlockSpec(memory_space=pl.ANY),                # word-emb table stays in HBM
            pl.BlockSpec((ts, H), lambda sb, b, _ids: (sb, 0)),    # pos-emb tile (outer-axis only)
            pl.BlockSpec((1, H), lambda sb, b, _ids: (0, 0)),      # gamma (constant)
            pl.BlockSpec((1, H), lambda sb, b, _ids: (0, 0)),      # beta  (constant)
        ],
        out_specs=pl.BlockSpec(
            (ts, H), lambda sb, b, _ids: (b * n_tiles + sb, 0)),
        scratch_shapes=[
            pltpu.VMEM((ts, H), word_emb.dtype),              # gathered word-embedding rows
            pltpu.SemaphoreType.DMA((n_chunks,)),             # one DMA sem per overlap chunk
        ],
    )

    kernel = functools.partial(_bert_embeddings_kernel, ts=ts, n_chunks=n_chunks)

    out_flat = pl.pallas_call(
        kernel,
        out_shape=jax.ShapeDtypeStruct((B * S_pad, H), jnp.float32),
        grid_spec=grid_spec,
        compiler_params=pltpu.CompilerParams(
            dimension_semantics=("parallel", "parallel")),    # intra-step overlap only: safe on megacore
    )(ids, word_emb, pos, g2, b2)

    out = out_flat.reshape(B, S_pad, H)
    if S_pad != S:
        out = out[:, :S, :]
    return out


def bert_embeddings_ref(input_ids, word_emb, pos_emb, gamma, beta):
    """Pure-JAX reference matching the PyTorch forward (eval mode)."""
    S = input_ids.shape[1]
    x = word_emb[input_ids] + pos_emb[:S][None, :, :]
    mean = x.mean(axis=-1, keepdims=True)
    var = ((x - mean) ** 2).mean(axis=-1, keepdims=True)
    xhat = (x - mean) / jnp.sqrt(var + LN_EPS)
    return xhat * gamma.reshape(-1) + beta.reshape(-1)


if __name__ == "__main__":
    # Small, module-consistent shapes.
    vocab_size = 64
    hidden_size = 32
    max_position_embeddings = 16
    batch, seq = 2, 8

    key = jax.random.PRNGKey(0)
    k_ids, k_word, k_pos = jax.random.split(key, 3)

    # Deterministic parameter init (matches __init__: normal std=0.02; LN gamma=1, beta=0).
    word_emb = 0.02 * jax.random.normal(
        k_word, (vocab_size, hidden_size), dtype=jnp.float32)
    pos_emb = 0.02 * jax.random.normal(
        k_pos, (max_position_embeddings, hidden_size), dtype=jnp.float32)
    gamma = jnp.ones((hidden_size,), dtype=jnp.float32)
    beta = jnp.zeros((hidden_size,), dtype=jnp.float32)

    input_ids = jax.random.randint(
        k_ids, (batch, seq), minval=0, maxval=vocab_size, dtype=jnp.int32)

    out = bert_embeddings(input_ids, word_emb, pos_emb, gamma, beta)
    out = jax.block_until_ready(out)

    expected = bert_embeddings_ref(input_ids, word_emb, pos_emb, gamma, beta)
    assert out.shape == (batch, seq, hidden_size)
    assert jnp.allclose(out, expected, atol=1e-5, rtol=1e-5), "mismatch vs reference"

    print("KERNEL_OK")
</pallas_src>

<mosaic_0001>
module attributes {stable_mosaic.version = 11 : i64} {
  func.func @_bert_embeddings_kernel(%arg0: i32, %arg1: i32, %arg2: memref<2x8xi32, #tpu.memory_space<smem>>, %arg3: memref<64x32xf32, #tpu.memory_space<any>>, %arg4: memref<8x32xf32, #tpu.memory_space<vmem>>, %arg5: memref<1x32xf32, #tpu.memory_space<vmem>>, %arg6: memref<1x32xf32, #tpu.memory_space<vmem>>, %arg7: memref<8x32xf32, #tpu.memory_space<vmem>>, %arg8: memref<8x32xf32, #tpu.memory_space<vmem>>, %arg9: memref<1x!tpu.dma_semaphore, #tpu.memory_space<semaphore_mem>>) attributes {dimension_semantics = [#tpu.dimension_semantics<parallel>, #tpu.dimension_semantics<parallel>], iteration_bounds = array<i64: 1, 2>, scalar_prefetch = 1 : i64, scratch_operands = 2 : i64, tpu.core_type = #tpu.core_type<tc>, window_params = [{}, {transform_indices = @transform_1, window_bounds = array<i64: 8, 32>}, {pipeline_mode = #tpu.pipeline_mode<synchronous>, transform_indices = @transform_2, window_bounds = array<i64: 1, 32>}, {pipeline_mode = #tpu.pipeline_mode<synchronous>, transform_indices = @transform_3, window_bounds = array<i64: 1, 32>}, {transform_indices = @transform_4, window_bounds = array<i64: 8, 32>}]} {
    %c8_i32 = arith.constant 8 : i32
    %0 = arith.muli %arg0, %c8_i32 : i32
    %c0_i32 = arith.constant 0 : i32
    %1 = arith.addi %0, %c0_i32 : i32
    %c0_i32_0 = arith.constant 0 : i32
    %2 = arith.addi %1, %c0_i32_0 : i32
    %3 = arith.index_cast %arg1 : i32 to index
    %4 = arith.index_cast %2 : i32 to index
    %5 = memref.load %arg2[%3, %4] : memref<2x8xi32, #tpu.memory_space<smem>>
    %c0_i32_1 = arith.constant 0 : i32
    %c0_i32_2 = arith.constant 0 : i32
    %6 = tpu.memref_slice %arg3[%5, %c0_i32_2] : memref<64x32xf32, #tpu.memory_space<any>> -> memref<1x32xf32, #tpu.memory_space<any>>
    %c0_i32_3 = arith.constant 0 : i32
    %c0_i32_4 = arith.constant 0 : i32
    %7 = tpu.memref_slice %arg8[%c0_i32_3, %c0_i32_4] : memref<8x32xf32, #tpu.memory_space<vmem>> -> memref<1x32xf32, #tpu.memory_space<vmem>>
    %8 = tpu.memref_slice %arg9[%c0_i32_1] : memref<1x!tpu.dma_semaphore, #tpu.memory_space<semaphore_mem>> -> memref<1x!tpu.dma_semaphore, #tpu.memory_space<semaphore_mem>>
    %9 = tpu.memref_squeeze %8 : memref<1x!tpu.dma_semaphore, #tpu.memory_space<semaphore_mem>> -> memref<!tpu.dma_semaphore, #tpu.memory_space<semaphore_mem>>
    tpu.enqueue_dma source(%6 : memref<1x32xf32, #tpu.memory_space<any>>) target(%7 : memref<1x32xf32, #tpu.memory_space<vmem>>) target_semaphore(%9 : memref<!tpu.dma_semaphore, #tpu.memory_space<semaphore_mem>>)
    %c0_i32_5 = arith.constant 0 : i32
    %10 = arith.addi %0, %c0_i32_5 : i32
    %c1_i32 = arith.constant 1 : i32
    %11 = arith.addi %10, %c1_i32 : i32
    %12 = arith.index_cast %arg1 : i32 to index
    %13 = arith.index_cast %11 : i32 to index
    %14 = memref.load %arg2[%12, %13] : memref<2x8xi32, #tpu.memory_space<smem>>
    %c0_i32_6 = arith.constant 0 : i32
    %c0_i32_7 = arith.constant 0 : i32
    %15 = tpu.memref_slice %arg3[%14, %c0_i32_7] : memref<64x32xf32, #tpu.memory_space<any>> -> memref<1x32xf32, #tpu.memory_space<any>>
    %c1_i32_8 = arith.constant 1 : i32
    %c0_i32_9 = arith.constant 0 : i32
    %16 = tpu.memref_slice %arg8[%c1_i32_8, %c0_i32_9] : memref<8x32xf32, #tpu.memory_space<vmem>> -> memref<1x32xf32, #tpu.memory_space<vmem>>
    %17 = tpu.memref_slice %arg9[%c0_i32_6] : memref<1x!tpu.dma_semaphore, #tpu.memory_space<semaphore_mem>> -> memref<1x!tpu.dma_semaphore, #tpu.memory_space<semaphore_mem>>
    %18 = tpu.memref_squeeze %17 : memref<1x!tpu.dma_semaphore, #tpu.memory_space<semaphore_mem>> -> memref<!tpu.dma_semaphore, #tpu.memory_space<semaphore_mem>>
    tpu.enqueue_dma source(%15 : memref<1x32xf32, #tpu.memory_space<any>>) target(%16 : memref<1x32xf32, #tpu.memory_space<vmem>>) target_semaphore(%18 : memref<!tpu.dma_semaphore, #tpu.memory_space<semaphore_mem>>)
    %c0_i32_10 = arith.constant 0 : i32
    %19 = arith.addi %0, %c0_i32_10 : i32
    %c2_i32 = arith.constant 2 : i32
    %20 = arith.addi %19, %c2_i32 : i32
    %21 = arith.index_cast %arg1 : i32 to index
    %22 = arith.index_cast %20 : i32 to index
    %23 = memref.load %arg2[%21, %22] : memref<2x8xi32, #tpu.memory_space<smem>>
    %c0_i32_11 = arith.constant 0 : i32
    %c0_i32_12 = arith.constant 0 : i32
    %24 = tpu.memref_slice %arg3[%23, %c0_i32_12] : memref<64x32xf32, #tpu.memory_space<any>> -> memref<1x32xf32, #tpu.memory_space<any>>
    %c2_i32_13 = arith.constant 2 : i32
    %c0_i32_14 = arith.constant 0 : i32
    %25 = tpu.memref_slice %arg8[%c2_i32_13, %c0_i32_14] : memref<8x32xf32, #tpu.memory_space<vmem>> -> memref<1x32xf32, #tpu.memory_space<vmem>>
    %26 = tpu.memref_slice %arg9[%c0_i32_11] : memref<1x!tpu.dma_semaphore, #tpu.memory_space<semaphore_mem>> -> memref<1x!tpu.dma_semaphore, #tpu.memory_space<semaphore_mem>>
    %27 = tpu.memref_squeeze %26 : memref<1x!tpu.dma_semaphore, #tpu.memory_space<semaphore_mem>> -> memref<!tpu.dma_semaphore, #tpu.memory_space<semaphore_mem>>
    tpu.enqueue_dma source(%24 : memref<1x32xf32, #tpu.memory_space<any>>) target(%25 : memref<1x32xf32, #tpu.memory_space<vmem>>) target_semaphore(%27 : memref<!tpu.dma_semaphore, #tpu.memory_space<semaphore_mem>>)
    %c0_i32_15 = arith.constant 0 : i32
    %28 = arith.addi %0, %c0_i32_15 : i32
    %c3_i32 = arith.constant 3 : i32
    %29 = arith.addi %28, %c3_i32 : i32
    %30 = arith.index_cast %arg1 : i32 to index
    %31 = arith.index_cast %29 : i32 to index
    %32 = memref.load %arg2[%30, %31] : memref<2x8xi32, #tpu.memory_space<smem>>
    %c0_i32_16 = arith.constant 0 : i32
    %c0_i32_17 = arith.constant 0 : i32
    %33 = tpu.memref_slice %arg3[%32, %c0_i32_17] : memref<64x32xf32, #tpu.memory_space<any>> -> memref<1x32xf32, #tpu.memory_space<any>>
    %c3_i32_18 = arith.constant 3 : i32
    %c0_i32_19 = arith.constant 0 : i32
    %34 = tpu.memref_slice %arg8[%c3_i32_18, %c0_i32_19] : memref<8x32xf32, #tpu.memory_space<vmem>> -> memref<1x32xf32, #tpu.memory_space<vmem>>
    %35 = tpu.memref_slice %arg9[%c0_i32_16] : memref<1x!tpu.dma_semaphore, #tpu.memory_space<semaphore_mem>> -> memref<1x!tpu.dma_semaphore, #tpu.memory_space<semaphore_mem>>
    %36 = tpu.memref_squeeze %35 : memref<1x!tpu.dma_semaphore, #tpu.memory_space<semaphore_mem>> -> memref<!tpu.dma_semaphore, #tpu.memory_space<semaphore_mem>>
    tpu.enqueue_dma source(%33 : memref<1x32xf32, #tpu.memory_space<any>>) target(%34 : memref<1x32xf32, #tpu.memory_space<vmem>>) target_semaphore(%36 : memref<!tpu.dma_semaphore, #tpu.memory_space<semaphore_mem>>)
    %c0_i32_20 = arith.constant 0 : i32
    %37 = arith.addi %0, %c0_i32_20 : i32
    %c4_i32 = arith.constant 4 : i32
    %38 = arith.addi %37, %c4_i32 : i32
    %39 = arith.index_cast %arg1 : i32 to index
    %40 = arith.index_cast %38 : i32 to index
    %41 = memref.load %arg2[%39, %40] : memref<2x8xi32, #tpu.memory_space<smem>>
    %c0_i32_21 = arith.constant 0 : i32
    %c0_i32_22 = arith.constant 0 : i32
    %42 = tpu.memref_slice %arg3[%41, %c0_i32_22] : memref<64x32xf32, #tpu.memory_space<any>> -> memref<1x32xf32, #tpu.memory_space<any>>
    %c4_i32_23 = arith.constant 4 : i32
    %c0_i32_24 = arith.constant 0 : i32
    %43 = tpu.memref_slice %arg8[%c4_i32_23, %c0_i32_24] : memref<8x32xf32, #tpu.memory_space<vmem>> -> memref<1x32xf32, #tpu.memory_space<vmem>>
    %44 = tpu.memref_slice %arg9[%c0_i32_21] : memref<1x!tpu.dma_semaphore, #tpu.memory_space<semaphore_mem>> -> memref<1x!tpu.dma_semaphore, #tpu.memory_space<semaphore_mem>>
    %45 = tpu.memref_squeeze %44 : memref<1x!tpu.dma_semaphore, #tpu.memory_space<semaphore_mem>> -> memref<!tpu.dma_semaphore, #tpu.memory_space<semaphore_mem>>
    tpu.enqueue_dma source(%42 : memref<1x32xf32, #tpu.memory_space<any>>) target(%43 : memref<1x32xf32, #tpu.memory_space<vmem>>) target_semaphore(%45 : memref<!tpu.dma_semaphore, #tpu.memory_space<semaphore_mem>>)
    %c0_i32_25 = arith.constant 0 : i32
    %46 = arith.addi %0, %c0_i32_25 : i32
    %c5_i32 = arith.constant 5 : i32
    %47 = arith.addi %46, %c5_i32 : i32
    %48 = arith.index_cast %arg1 : i32 to index
    %49 = arith.index_cast %47 : i32 to index
    %50 = memref.load %arg2[%48, %49] : memref<2x8xi32, #tpu.memory_space<smem>>
    %c0_i32_26 = arith.constant 0 : i32
    %c0_i32_27 = arith.constant 0 : i32
    %51 = tpu.memref_slice %arg3[%50, %c0_i32_27] : memref<64x32xf32, #tpu.memory_space<any>> -> memref<1x32xf32, #tpu.memory_space<any>>
    %c5_i32_28 = arith.constant 5 : i32
    %c0_i32_29 = arith.constant 0 : i32
    %52 = tpu.memref_slice %arg8[%c5_i32_28, %c0_i32_29] : memref<8x32xf32, #tpu.memory_space<vmem>> -> memref<1x32xf32, #tpu.memory_space<vmem>>
    %53 = tpu.memref_slice %arg9[%c0_i32_26] : memref<1x!tpu.dma_semaphore, #tpu.memory_space<semaphore_mem>> -> memref<1x!tpu.dma_semaphore, #tpu.memory_space<semaphore_mem>>
    %54 = tpu.memref_squeeze %53 : memref<1x!tpu.dma_semaphore, #tpu.memory_space<semaphore_mem>> -> memref<!tpu.dma_semaphore, #tpu.memory_space<semaphore_mem>>
    tpu.enqueue_dma source(%51 : memref<1x32xf32, #tpu.memory_space<any>>) target(%52 : memref<1x32xf32, #tpu.memory_space<vmem>>) target_semaphore(%54 : memref<!tpu.dma_semaphore, #tpu.memory_space<semaphore_mem>>)
    %c0_i32_30 = arith.constant 0 : i32
    %55 = arith.addi %0, %c0_i32_30 : i32
    %c6_i32 = arith.constant 6 : i32
    %56 = arith.addi %55, %c6_i32 : i32
    %57 = arith.index_cast %arg1 : i32 to index
    %58 = arith.index_cast %56 : i32 to index
    %59 = memref.load %arg2[%57, %58] : memref<2x8xi32, #tpu.memory_space<smem>>
    %c0_i32_31 = arith.constant 0 : i32
    %c0_i32_32 = arith.constant 0 : i32
    %60 = tpu.memref_slice %arg3[%59, %c0_i32_32] : memref<64x32xf32, #tpu.memory_space<any>> -> memref<1x32xf32, #tpu.memory_space<any>>
    %c6_i32_33 = arith.constant 6 : i32
    %c0_i32_34 = arith.constant 0 : i32
    %61 = tpu.memref_slice %arg8[%c6_i32_33, %c0_i32_34] : memref<8x32xf32, #tpu.memory_space<vmem>> -> memref<1x32xf32, #tpu.memory_space<vmem>>
    %62 = tpu.memref_slice %arg9[%c0_i32_31] : memref<1x!tpu.dma_semaphore, #tpu.memory_space<semaphore_mem>> -> memref<1x!tpu.dma_semaphore, #tpu.memory_space<semaphore_mem>>
    %63 = tpu.memref_squeeze %62 : memref<1x!tpu.dma_semaphore, #tpu.memory_space<semaphore_mem>> -> memref<!tpu.dma_semaphore, #tpu.memory_space<semaphore_mem>>
    tpu.enqueue_dma source(%60 : memref<1x32xf32, #tpu.memory_space<any>>) target(%61 : memref<1x32xf32, #tpu.memory_space<vmem>>) target_semaphore(%63 : memref<!tpu.dma_semaphore, #tpu.memory_space<semaphore_mem>>)
    %c0_i32_35 = arith.constant 0 : i32
    %64 = arith.addi %0, %c0_i32_35 : i32
    %c7_i32 = arith.constant 7 : i32
    %65 = arith.addi %64, %c7_i32 : i32
    %66 = arith.index_cast %arg1 : i32 to index
    %67 = arith.index_cast %65 : i32 to index
    %68 = memref.load %arg2[%66, %67] : memref<2x8xi32, #tpu.memory_space<smem>>
    %c0_i32_36 = arith.constant 0 : i32
    %c0_i32_37 = arith.constant 0 : i32
    %69 = tpu.memref_slice %arg3[%68, %c0_i32_37] : memref<64x32xf32, #tpu.memory_space<any>> -> memref<1x32xf32, #tpu.memory_space<any>>
    %c7_i32_38 = arith.constant 7 : i32
    %c0_i32_39 = arith.constant 0 : i32
    %70 = tpu.memref_slice %arg8[%c7_i32_38, %c0_i32_39] : memref<8x32xf32, #tpu.memory_space<vmem>> -> memref<1x32xf32, #tpu.memory_space<vmem>>
    %71 = tpu.memref_slice %arg9[%c0_i32_36] : memref<1x!tpu.dma_semaphore, #tpu.memory_space<semaphore_mem>> -> memref<1x!tpu.dma_semaphore, #tpu.memory_space<semaphore_mem>>
    %72 = tpu.memref_squeeze %71 : memref<1x!tpu.dma_semaphore, #tpu.memory_space<semaphore_mem>> -> memref<!tpu.dma_semaphore, #tpu.memory_space<semaphore_mem>>
    tpu.enqueue_dma source(%69 : memref<1x32xf32, #tpu.memory_space<any>>) target(%70 : memref<1x32xf32, #tpu.memory_space<vmem>>) target_semaphore(%72 : memref<!tpu.dma_semaphore, #tpu.memory_space<semaphore_mem>>)
    %c0 = arith.constant 0 : index
    %c0_40 = arith.constant 0 : index
    %73 = vector.load %arg5[%c0, %c0_40] : memref<1x32xf32, #tpu.memory_space<vmem>>, vector<1x32xf32>
    %c0_41 = arith.constant 0 : index
    %c0_42 = arith.constant 0 : index
    %74 = vector.load %arg6[%c0_41, %c0_42] : memref<1x32xf32, #tpu.memory_space<vmem>>, vector<1x32xf32>
    %c0_i32_43 = arith.constant 0 : i32
    %c0_i32_44 = arith.constant 0 : i32
    %c0_i32_45 = arith.constant 0 : i32
    %75 = tpu.memref_slice %arg3[%c0_i32_44, %c0_i32_45] : memref<64x32xf32, #tpu.memory_space<any>> -> memref<8x32xf32, #tpu.memory_space<any>>
    %c0_i32_46 = arith.constant 0 : i32
    %c0_i32_47 = arith.constant 0 : i32
    %76 = tpu.memref_slice %arg8[%c0_i32_46, %c0_i32_47] : memref<8x32xf32, #tpu.memory_space<vmem>> -> memref<8x32xf32, #tpu.memory_space<vmem>>
    %77 = tpu.memref_slice %arg9[%c0_i32_43] : memref<1x!tpu.dma_semaphore, #tpu.memory_space<semaphore_mem>> -> memref<1x!tpu.dma_semaphore, #tpu.memory_space<semaphore_mem>>
    %78 = tpu.memref_squeeze %77 : memref<1x!tpu.dma_semaphore, #tpu.memory_space<semaphore_mem>> -> memref<!tpu.dma_semaphore, #tpu.memory_space<semaphore_mem>>
    tpu.wait_dma2 semaphore(%78 : memref<!tpu.dma_semaphore, #tpu.memory_space<semaphore_mem>>) src(%75 : memref<8x32xf32, #tpu.memory_space<any>>) dst(%76 : memref<8x32xf32, #tpu.memory_space<vmem>>)
    %c0_48 = arith.constant 0 : index
    %c0_49 = arith.constant 0 : index
    %79 = vector.load %arg8[%c0_48, %c0_49] : memref<8x32xf32, #tpu.memory_space<vmem>>, vector<8x32xf32>
    %c0_50 = arith.constant 0 : index
    %c0_51 = arith.constant 0 : index
    %80 = vector.load %arg4[%c0_50, %c0_51] : memref<8x32xf32, #tpu.memory_space<vmem>>, vector<8x32xf32>
    %81 = arith.addf %79, %80 : vector<8x32xf32>
    %cst = arith.constant dense<0.000000e+00> : vector<8xf32>
    %82 = vector.multi_reduction <add>, %81, %cst [1] : vector<8x32xf32> to vector<8xf32>
    %83 = vector.shape_cast %82 : vector<8xf32> to vector<8x1xf32>
    %cst_52 = arith.constant 3.200000e+01 : f32
    %84 = vector.broadcast %cst_52 : f32 to vector<8x1xf32>
    %85 = arith.divf %83, %84 : vector<8x1xf32>
    %86 = vector.broadcast %85 : vector<8x1xf32> to vector<8x32xf32>
    %87 = arith.subf %81, %86 : vector<8x32xf32>
    %88 = arith.mulf %87, %87 : vector<8x32xf32>
    %cst_53 = arith.constant dense<0.000000e+00> : vector<8xf32>
    %89 = vector.multi_reduction <add>, %88, %cst_53 [1] : vector<8x32xf32> to vector<8xf32>
    %90 = vector.shape_cast %89 : vector<8xf32> to vector<8x1xf32>
    %cst_54 = arith.constant 3.200000e+01 : f32
    %91 = vector.broadcast %cst_54 : f32 to vector<8x1xf32>
    %92 = arith.divf %90, %91 : vector<8x1xf32>
    %93 = vector.broadcast %85 : vector<8x1xf32> to vector<8x32xf32>
    %94 = arith.subf %81, %93 : vector<8x32xf32>
    %cst_55 = arith.constant 9.99999997E-7 : f32
    %95 = vector.broadcast %cst_55 : f32 to vector<8x1xf32>
    %96 = arith.addf %92, %95 : vector<8x1xf32>
    %97 = math.rsqrt %96 : vector<8x1xf32>
    %98 = vector.broadcast %97 : vector<8x1xf32> to vector<8x32xf32>
    %99 = arith.mulf %94, %98 : vector<8x32xf32>
    %100 = vector.broadcast %73 : vector<1x32xf32> to vector<8x32xf32>
    %101 = arith.mulf %99, %100 : vector<8x32xf32>
    %102 = vector.broadcast %74 : vector<1x32xf32> to vector<8x32xf32>
    %103 = arith.addf %101, %102 : vector<8x32xf32>
    %c0_56 = arith.constant 0 : index
    %c0_57 = arith.constant 0 : index
    %104 = vector.load %arg7[%c0_56, %c0_57] : memref<8x32xf32, #tpu.memory_space<vmem>>, vector<8x32xf32>
    tpu.vector_store %arg7[%c0_56, %c0_57], %103 {strides = array<i32>} : memref<8x32xf32, #tpu.memory_space<vmem>>, vector<8x32xf32>,
    return
  }
  func.func @transform_1(%arg0: i32, %arg1: i32, %arg2: memref<2x8xi32, #tpu.memory_space<smem>>) -> (i32, i32) {
    %c0_i32 = arith.constant 0 : i32
    %c0_i32_0 = arith.constant 0 : i32
    return %arg0, %c0_i32 : i32, i32
  }
  func.func @transform_2(%arg0: i32, %arg1: i32, %arg2: memref<2x8xi32, #tpu.memory_space<smem>>) -> (i32, i32) {
    %c0_i32 = arith.constant 0 : i32
    %c0_i32_0 = arith.constant 0 : i32
    %c0_i32_1 = arith.constant 0 : i32
    return %c0_i32, %c0_i32_0 : i32, i32
  }
  func.func @transform_3(%arg0: i32, %arg1: i32, %arg2: memref<2x8xi32, #tpu.memory_space<smem>>) -> (i32, i32) {
    %c0_i32 = arith.constant 0 : i32
    %c0_i32_0 = arith.constant 0 : i32
    %c0_i32_1 = arith.constant 0 : i32
    return %c0_i32, %c0_i32_0 : i32, i32
  }
  func.func @transform_4(%arg0: i32, %arg1: i32, %arg2: memref<2x8xi32, #tpu.memory_space<smem>>) -> (i32, i32) {
    %c1_i32 = arith.constant 1 : i32
    %0 = arith.muli %arg1, %c1_i32 : i32
    %1 = arith.addi %0, %arg0 : i32
    %c0_i32 = arith.constant 0 : i32
    %c0_i32_0 = arith.constant 0 : i32
    return %1, %c0_i32 : i32, i32
  }
}

</mosaic_0001>

<bundles_post_ra>
// kernel: tpu_custom_call.1
= control target key start
LH: loop header
LB: loop body
LE: loop exit
PB: predicated region body
PF: predicated region fallthrough
CT: control target
= control target key end

     0   :  { %s1226_s0 = inlined_call_operand.vmem [shape: s32[2,8], index: 0, kind: input, shape index: {}]   ;;  %s1227_s1 = inlined_call_operand.vmem [shape: f32[64,32], index: 1, kind: input, shape index: {}]   ;;  %s1228_s2 = inlined_call_operand.vmem [shape: f32[16,32], index: 2, kind: input, shape index: {}]   ;;  %s1229_s3 = inlined_call_operand.vmem [shape: f32[1,32], index: 3, kind: input, shape index: {}]   ;;  %s1230_s4 = inlined_call_operand.vmem [shape: f32[1,32], index: 4, kind: input, shape index: {}]   ;;  %s1231_s5 = inlined_call_operand.hbm [shape: f32[16,32], index: 5, kind: output, shape index: {}]  }
   0x1   :  { %s10_s20 = sshll.u32 %s1226_s0, 4  ;;  %s11_s20 = int_to_ptr.vmem [resolvable:$true] %s10_s20 }
   0x2   :  { %s948_s21 = scalar_lea.vmem %s11_s20, 32  ;;  %p953_p1 = scmp.lt.s32.totalorder %s11_s20, %s11_s20 }
   0x3   :  { %p949_p0 = scmp.ne.s32.totalorder %s11_s20, %s948_s21  ;;  %p954_p2 = scmp.lt.s32.totalorder %s948_s21, %s948_s21 }
   0x5   :  { %p955_p3 = por %p954_p2, %p953_p1 }
   0x7   :  { %p956_p4 = pnand %p955_p3, %p949_p0 }
   0x9   :  { %959 = shalt.err (!%p956_p4)  }
   0xa   :  { %s1042_s22 = smov [#allocation5]  }
   0xb   :  { %13 = dma.vmem_to_smem %s11_s20, 32, %s1042_s22, [#allocation4] }
   0xc   :  { %1010 = dma.done.wait [#allocation4], 32 }
   0xd   :  { %1011 = vsyncadd [#allocation4], 4294967264 }
   0xe   :  { %15 = sfence }
   0xf   :  { %16 = vsyncpa [#allocation7], 0 }
  0x10   :  { %18 = vsyncpa [#allocation7 + $0x1], 0  ;;  %s1077_s23 = smov 0   ;;  %s1079_s24 = smov 0  }
  0x11   :  { %s1081_s0 = smov 0   ;;  %s1083_s25 = smov 0  }
  0x12   :  { %s1085_s26 = smov 0   ;;  %s1087_s27 = smov 0  }
  0x13 LB: > { %s869_s28 = sadd.s32 4294967295, %s1040_s27   ;;  %s870_s29 = sadd.s32 4294967294, %s1040_s27   ;;  %s1040_s27 = sphi %s1087_s27, %s24_s27   ;;  %s1036_s26 = sphi %s1085_s26, %s1238_s26   ;;  %s1032_s25 = sphi %s1083_s25, %s1237_s25   ;;  %s1028_s0 = sphi %s1081_s0, %s1236_s0   ;;  %s1024_s24 = sphi %s1079_s24, %s1235_s24   ;;  %s1020_s23 = sphi %s1077_s23, %s1234_s23  }
  0x14   : > { %s33_s30 = sadd.s32 1, %s1036_s26  ;;  %s113_s6 = sadd.s32 1, %s1028_s0 }
  0x15   : > { %p34_p5 = scmp.ge.s32.totalorder %s33_s30, 2  ;;  %p123_p6 = scmp.ne.s32.totalorder %s1028_s0, %s1024_s24 }
  0x16   : > { %p124_p7 = scmp.eq.s32.totalorder %s869_s28, 1  ;;  %p129_p8 = scmp.ne.s32.totalorder %s1024_s24, %s1020_s23 }
  0x17   : > { %s1240_s30 = smov (%p34_p5, %s33_s30), 0  ;;  %p130_p10 = scmp.eq.s32.totalorder %s870_s29, 1 }
  0x18   : > { %p1115_p9 = por %p124_p7, %p123_p6  ;;  %s110_s8 = ssub.s32 %s1036_s26, %s1240_s30 }
  0x19   : > { %p873_p11 = scmp.ge.s32.totalorder %s1040_s27, 1  ;;  %p111_p12 = scmp.eq.s32.totalorder %s110_s8, 0 }
  0x1a   : > { %p1122_p13 = por %p130_p10, %p129_p8  ;;  %p161_p0 = scmp.lt.s32.totalorder %s1040_s27, 3 }
  0x1b   : > { %s1128_s10 = scalar_select %p111_p12, %s1028_s0, %s113_s6  }
  0x1c   : > { %p162_p1 = pnand %p873_p11, %p161_p0 }
  0x1d   : > { %s181_s11 = sand.u32 (!%p162_p1), 1, %s1024_s24   ;;  %s1131_s12 = sshll.u32 (!%p162_p1), %s1032_s25, 7 }
  0x1e   : > { %165 = sbr.rel (%p162_p1) target bundleno = 440 (0x1b8), region = 32  ;;  %s1135_s13 = sshll.u32 (!%p162_p1), %s181_s11, 3 }
  0x1f   : > { %s197_s14 = sld [smem:[#allocation5 + %s1131_s12]] (!%p162_p1)  ;;  %s183_s18 = scalar_lea.vmem (!%p162_p1), [#allocation6], %s1135_s13 }
  0x25   : > { %s198_s17 = scalar_lea.vmem %s1227_s1, %s197_s14 }
  0x26   : > { %v217_v0 = vld [vmem:[%s198_s17] sm:$0x1] }
  0x27   : > { %218 = vst [vmem:[#allocation2] sm:$0x1] %v217_v0 }
  0x28   : > { %244 = vsyncadd [#allocation3], 16  ;;  %s252_s19 = sadd.s32 1, %s1131_s12 }
  0x29   : > { %s253_s20 = sld [smem:[#allocation5 + %s252_s19]] }
  0x2f   : > { %s254_s25 = scalar_lea.vmem %s1227_s1, %s253_s20 }
  0x30   : > { %v274_v1 = vld [vmem:[%s254_s25] sm:$0x1] }
  0x31   : > { %275 = vst [vmem:[#allocation2 + $0x1] sm:$0x1] %v274_v1 }
  0x32   : > { %301 = vsyncadd [#allocation3], 16  ;;  %s309_s28 = sadd.s32 2, %s1131_s12 }
  0x33   : > { %s310_s29 = sld [smem:[#allocation5 + %s309_s28]] }
  0x39   : > { %s311_s14 = scalar_lea.vmem %s1227_s1, %s310_s29 }
  0x3a   : > { %v331_v2 = vld [vmem:[%s311_s14] sm:$0x1] }
  0x3b   : > { %332 = vst [vmem:[#allocation2 + $0x2] sm:$0x1] %v331_v2 }
  0x3c   : > { %358 = vsyncadd [#allocation3], 16  ;;  %s366_s15 = sadd.s32 3, %s1131_s12 }
  0x3d   : > { %s367_s16 = sld [smem:[#allocation5 + %s366_s15]] }
  0x43   : > { %s368_s20 = scalar_lea.vmem %s1227_s1, %s367_s16 }
  0x44   : > { %v388_v3 = vld [vmem:[%s368_s20] sm:$0x1] }
  0x45   : > { %389 = vst [vmem:[#allocation2 + $0x3] sm:$0x1] %v388_v3 }
  0x46   : > { %415 = vsyncadd [#allocation3], 16  ;;  %s423_s21 = sadd.s32 4, %s1131_s12 }
  0x47   : > { %s424_s22 = sld [smem:[#allocation5 + %s423_s21]] }
  0x4d   : > { %s425_s29 = scalar_lea.vmem %s1227_s1, %s424_s22 }
  0x4e   : > { %v445_v4 = vld [vmem:[%s425_s29] sm:$0x1] }
  0x4f   : > { %446 = vst [vmem:[#allocation2 + $0x4] sm:$0x1] %v445_v4 }
  0x50   : > { %472 = vsyncadd [#allocation3], 16  ;;  %s480_s6 = sadd.s32 5, %s1131_s12 }
  0x51   : > { %s481_s8 = sld [smem:[#allocation5 + %s480_s6]] }
  0x57   : > { %s482_s16 = scalar_lea.vmem %s1227_s1, %s481_s8 }
  0x58   : > { %v502_v5 = vld [vmem:[%s482_s16] sm:$0x1] }
  0x59   : > { %503 = vst [vmem:[#allocation2 + $0x5] sm:$0x1] %v502_v5 }
  0x5a   : > { %529 = vsyncadd [#allocation3], 16  ;;  %s537_s17 = sadd.s32 6, %s1131_s12 }
  0x5b   : > { %s538_s19 = sld [smem:[#allocation5 + %s537_s17]] }
  0x61   : > { %s539_s22 = scalar_lea.vmem %s1227_s1, %s538_s19 }
  0x62   : > { %v559_v6 = vld [vmem:[%s539_s22] sm:$0x1] }
  0x63   : > { %560 = vst [vmem:[#allocation2 + $0x6] sm:$0x1] %v559_v6 }
  0x64   : > { %586 = vsyncadd [#allocation3], 16  ;;  %s594_s25 = sadd.s32 7, %s1131_s12 }
  0x65   : > { %s595_s28 = sld [smem:[#allocation5 + %s594_s25]] }
  0x6b   : > { %s596_s8 = scalar_lea.vmem %s1227_s1, %s595_s28 }
  0x6c   : > { %v616_v7 = vld [vmem:[%s596_s8] sm:$0x1] }
  0x6d   : > { %617 = vst [vmem:[#allocation2 + $0x7] sm:$0x1] %v616_v7 }
  0x6e   : > { %643 = vsyncadd [#allocation3], 16  ;;  %v883_v8 = vld [vmem:[%s1229_s3] ss:$0 sm:$0xff] }
  0x6f   : > { %v884_v9 = vld [vmem:[%s1230_s4] ss:$0 sm:$0xff] }
  0x70   : > { %1012 = dma.done.wait [#allocation3], 128 }
  0x71   : > { %1013 = vsyncadd [#allocation3], 4294967168  ;;  %v650_v11 = vld [vmem:[%s1228_s2] sm:$0xff]  ;;  %vm652_vm0 = vcmask 261120   ;;  %s697_s21 = sshll.u32 %s183_s18, 4  ;;  %s695_s28 = scalar_lea.hbm %s1231_s5, %s1131_s12  ;;  %s698_s21 = int_to_ptr.vmem [resolvable:$true] %s697_s21 }
  0x72   : > { %s683_s29 = scalar_lea.sflag [#allocation7], %s181_s11  ;;  %s960_s6 = scalar_lea.vmem %s698_s21, 128 }
  0x73   : > { %p961_p2 = scmp.ne.s32.totalorder %s698_s21, %s960_s6  ;;  %s1043_s8 = smov [#allocation6]  }
  0x74   : > { %v649_v10 = vld [vmem:[#allocation2] sm:$0xff]  ;;  %s964_s14 = sshll.u32 %s1043_s8, 4  ;;  %s965_s14 = int_to_ptr.vmem [resolvable:$false] %s964_s14 }
  0x75   : > { %v651_v12 = vadd.f32 %v650_v11, %v649_v10  ;;  %p962_p3 = pnand %p961_p2, %p1115_p9  ;;  %s966_s15 = scalar_lea.vmem %s965_s14, 256 }
  0x76   : > { %p967_p5 = scmp.lt.s32.totalorder %s698_s21, %s965_s14  ;;  %p968_p6 = scmp.lt.s32.totalorder %s966_s15, %s960_s6 }
  0x77   : > { %v653_v13 = vsel %vm652_vm0, %v651_v12, 0.0  ;;  %p963_p4 = pneg %p962_p3 }
  0x78   : > { %654 = vadd.xlane.f32.xlu0 %v653_v13  ;;  %p969_p7 = por %p968_p6, %p967_p5 }
  0x7a   : > { %p970_p8 = pnand %p969_p7, %p963_p4 }
 0x101   : > { %v655_v14 = vpop.xlane.xlu0 %654 }
 0x102   : > { %v657_v15 = vmul.f32 0.03125, %v655_v14 }
 0x104   : > { %v658_v16 = vsub.f32 %v651_v12, %v657_v15 }
 0x106   : > { %v659_v17 = vmul.f32 %v658_v16, %v658_v16 }
 0x108   : > { %v660_v18 = vsel %vm652_vm0, %v659_v17, 0.0 }
 0x109   : > { %661 = vadd.xlane.f32.xlu0 %v660_v18 }
 0x192   : > { %v662_v19 = vpop.xlane.xlu0 %661 }
 0x193   : > { %v663_v20 = vmul.f32 0.03125, %v662_v19 }
 0x195   : > { %v664_v21 = vadd.f32 1e-06, %v663_v20 }
 0x197   : > { %946 = vrsqrt.f32 %v664_v21 }
 0x1a4   : > { %v947_v22 = vpop.eup %946 }
 0x1a5   : > { %v666_v23 = vmul.f32 %v947_v22, %v658_v16 }
 0x1a7   : > { %v673_v24 = vmul.f32 %v883_v8, %v666_v23 }
 0x1a9   : > { %v680_v25 = vadd.f32 %v884_v9, %v673_v24 }
 0x1ab   : > { %681 = vst.msk [vmem:[%s183_s18] sm:$0xff] %vm652_vm0, %v680_v25 }
 0x1ac   : > { %973 = shalt.err (!%p970_p8)
}
 0x1ad   : > { %s974_s12 = scalar_lea.hbm %s695_s28, 128  ;;  %s978_s18 = scalar_lea.hbm %s1231_s5, 256 }
 0x1ae   : > { %p975_p10 = scmp.ne.s32.totalorder %s695_s28, %s974_s12  ;;  %p979_p0 = scmp.lt.s32.totalorder %s695_s28, %s1231_s5 }
 0x1af   : > { %p980_p1 = scmp.lt.s32.totalorder %s978_s18, %s974_s12 }
 0x1b0   : > { %p976_p11 = pnand %p975_p10, %p1115_p9 }
 0x1b1   : > { %p981_p2 = por %p980_p1, %p979_p0 }
 0x1b2   : > { %p977_p12 = pneg %p976_p11 }
 0x1b4   : > { %p982_p3 = pnand %p981_p2, %p977_p12 }
 0x1b6   : > { %985 = shalt.err (!%p982_p3)
}
 0x1b7   : > { %890 = dma.vmem_to_hbm [thread:$0]  (%p1115_p9), %s698_s21, 128, %s695_s28, %s683_s29  }
 0x1b8 PF: > { %p896_p4 = scmp.ge.s32.totalorder %s1040_s27, 2  ;;  %s709_s19 = sand.u32 1, %s1020_s23  }
 0x1b9   : > { %s710_s20 = scalar_lea.sflag [#allocation7], %s709_s19 }
 0x1ba   : > { %p893_p5 = pnand %p896_p4, %p1122_p13 }
 0x1bc   : > { %p894_p6 = pneg %p893_p5 }
 0x1be   : > { %1015 = dma.done.wait (%p894_p6), %s710_s20, 128  }
 0x1bf   : > { %1017 = vsyncadd (%p894_p6), %s710_s20, 4294967168  ;;  %s24_s27 = sadd.s32 1, %s1040_s27   ;;  %s1234_s23 = smov %s1024_s24 }
 0x1c0   : > { %p21_p7 = scmp.ge.s32.totalorder %s24_s27, 4   ;;  %s1235_s24 = smov %s1028_s0 }
 0x1c1   : > { %s1236_s0 = smov %s1128_s10  ;;  %s1237_s25 = smov %s1036_s26 }
 0x1c2   : > { %s1238_s26 = smov %s1240_s30  ;;  %23 = sbr.rel (!%p21_p7) target bundleno = 19 (0x13), region = 402 }
 0x1c7   :  { %715 = vsyncpa [#allocation7], 1 }
 0x1c8   :  { %717 = vsyncpa [#allocation7 + $0x1], 1 }
 0x1c9   :  { %718 = vsyncmov [#allocation3] }
 0x1cc   :  { %s719_s7 = vpop.sfrf %718 }
 0x1cd   :  { %p889_p9 = scmp.ne.s32.totalorder %s719_s7, 0 }
 0x1cf   :  { %723 = shalt.err (%p889_p9)  }

</bundles_post_ra>
